<compile_context>
chip_gen: v7x
topology: tpu7x:2x2x1
jax: 0.10.0
libtpu: 0.0.40
codegen_flags: <defaults>
</compile_context>

<pallas_src>
import functools
import math

import jax
import jax.numpy as jnp
from jax.experimental import pallas as pl
from jax.experimental.pallas import tpu as pltpu

# Deterministic "parameters" of the module (constructor args, not weights).
MIN_LEVEL_DB = -100.0
NORMALIZATION = True

_LN10 = math.log(10.0)

# Inputs at or below this stay a single block (dispatch/DMA-ramp dominated;
# pipelining buys nothing).  Above it we guarantee >= _MIN_GRID_STEPS blocks.
_MIN_PIPELINE_BYTES = 1 << 20
_MIN_GRID_STEPS = 8
# Below this block size, run a 3-deep input pipeline to hide per-DMA fixed cost.
_SMALL_BLOCK_BYTES = 512 << 10


def _normalize_db_kernel(x_ref, o_ref, *, scale, normalization):
    # NOTE: on partial edge blocks jnp.log runs on padded (unspecified) lanes;
    # those lanes are masked on store, so outputs are correct (only relevant
    # for NaN-checking debug modes, harmless otherwise).
    x = x_ref[...]
    ln_spec = jnp.log(jnp.maximum(x, 1e-5))            # single EUP op
    if normalization:
        # 1 + scale*ln(x) == (min_db - 20*log10(x)) / min_db
        y = jnp.clip(1.0 + scale * ln_spec, 0.0, 1.0)  # VPU mul-add + selects
    else:
        y = scale * ln_spec                            # log10(x) = ln(x)/ln(10)
    o_ref[...] = y.astype(o_ref.dtype)


def _plan(n_mels, time, itemsize, target_block_bytes):
    """Pick (view_shape, block_shape, grid).

    view_shape is the 2-D shape the wrapper reshapes the (n_mels, time) input
    to before the pallas_call (None => keep it as-is).  Blocks are always
    (8,128)-legal: row counts are multiples of 8 (or the full dim) and the
    lane dim is either the full dim or a multiple of 128.
    """
    total = n_mels * time
    total_bytes = total * itemsize

    # Tiny inputs: one block, zero tiling overhead.
    if total_bytes <= min(_MIN_PIPELINE_BYTES, target_block_bytes):
        return None, (n_mels, time), (1, 1)

    # Cap block bytes so larger inputs always get >= _MIN_GRID_STEPS pipelined,
    # megacore-shardable steps (v7x: 2 TCs x >= 4 steps each).
    block_budget = min(target_block_bytes, total_bytes // _MIN_GRID_STEPS)

    row_bytes = time * itemsize
    if 8 * row_bytes <= block_budget:
        # Full time axis per block (contiguous rows); tile mel rows in
        # multiples of 8.
        tile_rows = max(8, (block_budget // row_bytes) // 8 * 8)
        tile_rows = min(tile_rows, n_mels)
        return None, (tile_rows, time), (pl.cdiv(n_mels, tile_rows), 1)

    # Very long time axis: prefer a flat contiguous (rows, lanes) view so each
    # block is one contiguous DMA run and every store is lane-dense/unmasked.
    for lanes in (1024, 512, 256, 128):
        if total % lanes == 0:
            rows = total // lanes
            lane_bytes = lanes * itemsize
            tile_rows = max(8, (block_budget // lane_bytes) // 8 * 8)
            tile_rows = min(tile_rows, rows)
            return ((rows, lanes), (tile_rows, lanes),
                    (pl.cdiv(rows, tile_rows), 1))

    # Fallback (total not divisible by 128): tile the time axis in multiples
    # of 128 lanes; edge blocks get masked partial stores but stay correct.
    tile_rows = min(8, n_mels)
    tile_cols = max(128, (block_budget // (tile_rows * itemsize)) // 128 * 128)
    tile_cols = min(tile_cols, time)
    return None, (tile_rows, tile_cols), (pl.cdiv(n_mels, tile_rows),
                                          pl.cdiv(time, tile_cols))


def normalize_db(specgram, *, min_level_db=MIN_LEVEL_DB,
                 normalization=NORMALIZATION,
                 target_block_bytes=4 * 1024 * 1024,
                 out_dtype=None):
    """specgram: (1, n_mels, time) float32 -> (n_mels, time).

    out_dtype defaults to the input dtype.  Pass jnp.bfloat16 to cut HBM
    writeback bytes by 2x (compute stays f32) when the downstream WaveRNN
    consumer accepts bf16 -- this kernel is bandwidth-bound on all TPU gens.
    """
    x = jnp.squeeze(specgram, axis=0)                  # torch .squeeze(0)
    n_mels, time = x.shape
    out_dtype = x.dtype if out_dtype is None else jnp.dtype(out_dtype)
    itemsize = jnp.dtype(x.dtype).itemsize

    scale = (-20.0 / (min_level_db * _LN10)) if normalization else (1.0 / _LN10)
    kernel = functools.partial(
        _normalize_db_kernel, scale=scale, normalization=normalization)

    view_shape, block_shape, grid = _plan(n_mels, time, itemsize,
                                          target_block_bytes)
    if view_shape is not None:
        x = x.reshape(view_shape)                      # free elementwise view
    kernel_shape = x.shape

    block_bytes = block_shape[0] * block_shape[1] * itemsize
    n_blocks = grid[0] * grid[1]
    index_map = lambda i, j: (i, j)
    if n_blocks > 2 and block_bytes < _SMALL_BLOCK_BYTES:
        # Small-block regime: 3-deep input pipeline hides per-DMA fixed cost.
        in_spec = pl.BlockSpec(block_shape, index_map,
                               pipeline_mode=pl.Buffered(3))
    else:
        in_spec = pl.BlockSpec(block_shape, index_map)
    out_spec = pl.BlockSpec(block_shape, index_map)

    out = pl.pallas_call(
        kernel,
        out_shape=jax.ShapeDtypeStruct(kernel_shape, out_dtype),
        grid_spec=pltpu.PrefetchScalarGridSpec(
            num_scalar_prefetch=0,
            grid=grid,
            in_specs=[in_spec],
            out_specs=out_spec,
        ),
        compiler_params=pltpu.CompilerParams(
            # Both axes independent -> megacore sharding on v7x; no-op on
            # v5e/v6e.
            dimension_semantics=("parallel", "parallel"),
            # 2x(in+out)x4 MiB = 16 MiB worst case fits; raises v5e's 16 MiB
            # scoped default, stays under v7x's 32 MiB scoped / 64 MiB VMEM.
            vmem_limit_bytes=32 * 1024 * 1024,
        ),
    )(x)

    if view_shape is not None:
        out = out.reshape(n_mels, time)
    return out


def _reference(specgram, min_level_db=MIN_LEVEL_DB, normalization=NORMALIZATION):
    x = jnp.squeeze(specgram, axis=0)
    log_spec = jnp.log10(jnp.maximum(x, 1e-5))
    if normalization:
        return jnp.clip((min_level_db - 20.0 * log_spec) / min_level_db, 0.0, 1.0)
    return log_spec


if __name__ == "__main__":
    key = jax.random.PRNGKey(0)
    k0, k1 = jax.random.split(key)

    # 1) Typical WaveRNN eval shape (batch=1, n_mels=80, time=300): tiny ->
    #    single block (dispatch-dominated; see fusion note at top of file).
    specgram = 2.0 * jax.random.uniform(k0, (1, 80, 300), dtype=jnp.float32)
    ref = _reference(specgram)
    out = jax.block_until_ready(normalize_db(specgram))
    assert out.shape == ref.shape and out.dtype == ref.dtype
    assert jnp.allclose(out, ref, atol=1e-5, rtol=1e-5), "mismatch (single block)"

    # 2) Forced small-block budget: exercises the 2-D cdiv grid with masked
    #    edge blocks + the Buffered(3) small-block input pipeline.
    out_tiled = jax.block_until_ready(
        normalize_db(specgram, target_block_bytes=8 * 1024))
    assert jnp.allclose(out_tiled, ref, atol=1e-5, rtol=1e-5), "mismatch (tiled)"

    # 3) Longer audio: multi-step pipelined path with full-time-row blocks
    #    (>= 8 grid steps so both v7x TCs get work).
    spec_long = 2.0 * jax.random.uniform(k1, (1, 80, 4096), dtype=jnp.float32)
    ref_long = _reference(spec_long)
    out_long = jax.block_until_ready(normalize_db(spec_long))
    assert jnp.allclose(out_long, ref_long, atol=1e-5, rtol=1e-5), \
        "mismatch (pipelined)"

    # 4) Flattened contiguous-view path (time too long for the block budget;
    #    total % 1024 == 0 -> (rows, 1024) view, contiguous blocks).
    spec_flat = 2.0 * jax.random.uniform(k1, (1, 64, 2048), dtype=jnp.float32)
    ref_flat = _reference(spec_flat)
    out_flat = jax.block_until_ready(
        normalize_db(spec_flat, target_block_bytes=32 * 1024))
    assert jnp.allclose(out_flat, ref_flat, atol=1e-5, rtol=1e-5), \
        "mismatch (flat view)"

    # 5) bf16 writeback (halves output HBM traffic; compute stays f32).
    out_bf16 = jax.block_until_ready(
        normalize_db(spec_long, out_dtype=jnp.bfloat16))
    assert out_bf16.dtype == jnp.bfloat16
    assert jnp.allclose(out_bf16.astype(jnp.float32), ref_long,
                        atol=1e-2, rtol=1e-2), "mismatch (bf16 out)"

    # 6) normalization=False branch (plain log10 output).
    out_raw = jax.block_until_ready(normalize_db(specgram, normalization=False))
    ref_raw = _reference(specgram, normalization=False)
    assert jnp.allclose(out_raw, ref_raw, atol=1e-5, rtol=1e-5), \
        "mismatch (no norm)"

    print("KERNEL_OK")
</pallas_src>

<mosaic_0001>
module attributes {stable_mosaic.version = 11 : i64} {
  func.func @_normalize_db_kernel(%arg0: i32, %arg1: i32, %arg2: memref<80x300xf32, #tpu.memory_space<vmem>>, %arg3: memref<80x300xf32, #tpu.memory_space<vmem>>) attributes {dimension_semantics = [#tpu.dimension_semantics<parallel>, #tpu.dimension_semantics<parallel>], iteration_bounds = array<i64: 1, 1>, scalar_prefetch = 0 : i64, scratch_operands = 0 : i64, tpu.core_type = #tpu.core_type<tc>, window_params = [{transform_indices = @transform_0, window_bounds = array<i64: 80, 300>}, {transform_indices = @transform_1, window_bounds = array<i64: 80, 300>}]} {
    %c0 = arith.constant 0 : index
    %c0_0 = arith.constant 0 : index
    %0 = vector.load %arg2[%c0, %c0_0] : memref<80x300xf32, #tpu.memory_space<vmem>>, vector<80x300xf32>
    %cst = arith.constant 9.99999974E-6 : f32
    %1 = vector.broadcast %cst : f32 to vector<80x300xf32>
    %2 = arith.maximumf %0, %1 : vector<80x300xf32>
    %3 = math.log %2 : vector<80x300xf32>
    %cst_1 = arith.constant 0.0868588984 : f32
    %4 = vector.broadcast %cst_1 : f32 to vector<80x300xf32>
    %5 = arith.mulf %4, %3 : vector<80x300xf32>
    %cst_2 = arith.constant 1.000000e+00 : f32
    %6 = vector.broadcast %cst_2 : f32 to vector<80x300xf32>
    %7 = arith.addf %6, %5 : vector<80x300xf32>
    %cst_3 = arith.constant 0.000000e+00 : f32
    %cst_4 = arith.constant 1.000000e+00 : f32
    %8 = vector.broadcast %cst_3 : f32 to vector<80x300xf32>
    %9 = arith.maximumf %8, %7 : vector<80x300xf32>
    %10 = vector.broadcast %cst_4 : f32 to vector<80x300xf32>
    %11 = arith.minimumf %10, %9 : vector<80x300xf32>
    %c0_5 = arith.constant 0 : index
    %c0_6 = arith.constant 0 : index
    %12 = vector.load %arg3[%c0_5, %c0_6] : memref<80x300xf32, #tpu.memory_space<vmem>>, vector<80x300xf32>
    tpu.vector_store %arg3[%c0_5, %c0_6], %11 {strides = array<i32>} : memref<80x300xf32, #tpu.memory_space<vmem>>, vector<80x300xf32>,
    return
  }
  func.func @transform_0(%arg0: i32, %arg1: i32) -> (i32, i32) {
    %c0_i32 = arith.constant 0 : i32
    return %arg0, %arg1 : i32, i32
  }
  func.func @transform_1(%arg0: i32, %arg1: i32) -> (i32, i32) {
    %c0_i32 = arith.constant 0 : i32
    return %arg0, %arg1 : i32, i32
  }
}

</mosaic_0001>

<bundles_post_ra>
// kernel: tpu_custom_call.1
= control target key start
LH: loop header
LB: loop body
LE: loop exit
PB: predicated region body
PF: predicated region fallthrough
CT: control target
= control target key end

     0   :  { %6 = vsyncpa [#allocation3], 0  ;;  %s507_s0 = inlined_call_operand.hbm [shape: f32[80,300], index: 0, kind: input, shape index: {}]   ;;  %s508_s1 = inlined_call_operand.hbm [shape: f32[80,300], index: 1, kind: output, shape index: {}]  }
   0x1   :  { %7 = vsyncpa [#allocation4], 0  ;;  %s423_s6 = smov [#allocation2]   ;;  %s375_s10 = scalar_lea.hbm %s507_s0, 3840 }
   0x2   :  { %s13_s7 = sshll.u32 %s423_s6, 4  ;;  %p376_p0 = scmp.ne.s32.totalorder %s507_s0, %s375_s10  ;;  %s14_s7 = int_to_ptr.vmem [resolvable:$true] %s13_s7 }
   0x3   :  { %p379_p1 = scmp.lt.u32.totalorder %s375_s10, %s507_s0 }
   0x5   :  { %p381_p2 = pnand %p379_p1, %p376_p0 }
   0x7   :  { %384 = shalt.err (!%p381_p2)
}
   0x8   :  { %s385_s15 = scalar_lea.vmem %s14_s7, 3840  ;;  %p390_p4 = scmp.lt.s32.totalorder %s14_s7, %s14_s7 }
   0x9   :  { %p386_p3 = scmp.ne.s32.totalorder %s14_s7, %s385_s15  ;;  %p391_p5 = scmp.lt.s32.totalorder %s385_s15, %s385_s15 }
   0xb   :  { %p392_p6 = por %p391_p5, %p390_p4 }
   0xd   :  { %p393_p7 = pnand %p392_p6, %p386_p3 }
   0xf   :  { %396 = shalt.err (!%p393_p7)
}
  0x10   :  { %s424_s16 = smov 384   ;;  %s425_s17 = smov 24  }
  0x11   :  { %19 = dma.hbm_to_vmem [thread:$0]  %s507_s0, 3840, %s14_s7, [#allocation3], %s424_s16, %s424_s16, %s425_s17  }
  0x12   :  { %419 = dma.done.wait [#allocation3], 3840  }
  0x13   :  { %420 = vsyncadd [#allocation3], 4294963456  ;;  %v23_v0 = vld [vmem:[#allocation2] sm:$0xff]  ;;  %v24_v1 = vld [vmem:[#allocation2 + $0x8] sm:$0xff]  ;;  %vm265_vm0 = vcmask 359424   ;;  %s426_s0 = smov [#allocation5]  }
  0x14   :  { %v25_v2 = vld [vmem:[#allocation2 + $0x10] sm:$0xff]  ;;  %v53_v3 = vmax.f32 %v23_v0, 1e-05  ;;  %v54_v4 = vmax.f32 %v24_v1, 1e-05  ;;  %v26_v6 = vld [vmem:[#allocation2 + $0x18] sm:$0xff] }
  0x15   :  { %v55_v5 = vmax.f32 %v25_v2, 1e-05  ;;  %v27_v7 = vld [vmem:[#allocation2 + $0x20] sm:$0xff]  ;;  %v28_v8 = vld [vmem:[#allocation2 + $0x28] sm:$0xff]  ;;  %v56_v9 = vmax.f32 %v26_v6, 1e-05 }
  0x16   :  { %315 = vlog2.f32 %v53_v3  ;;  %v57_v10 = vmax.f32 %v27_v7, 1e-05  ;;  %v58_v11 = vmax.f32 %v28_v8, 1e-05  ;;  %v29_v12 = vld [vmem:[#allocation2 + $0x30] sm:$0xff]  ;;  %v30_v13 = vld [vmem:[#allocation2 + $0x38] sm:$0xff] }
  0x17   :  { %317 = vlog2.f32 %v54_v4  ;;  %v31_v14 = vld [vmem:[#allocation2 + $0x40] sm:$0xff]  ;;  %v59_v15 = vmax.f32 %v29_v12, 1e-05  ;;  %v60_v16 = vmax.f32 %v30_v13, 1e-05  ;;  %v32_v17 = vld [vmem:[#allocation2 + $0x48] sm:$0xff] }
  0x18   :  { %319 = vlog2.f32 %v55_v5  ;;  %v33_v18 = vld [vmem:[#allocation2 + $0x50] sm:$0xff]  ;;  %v61_v19 = vmax.f32 %v31_v14, 1e-05  ;;  %v34_v20 = vld [vmem:[#allocation2 + $0x58] sm:$0xff]  ;;  %v62_v21 = vmax.f32 %v32_v17, 1e-05 }
  0x19   :  { %321 = vlog2.f32 %v56_v9  ;;  %v35_v22 = vld [vmem:[#allocation2 + $0x60] sm:$0xff]  ;;  %v36_v23 = vld [vmem:[#allocation2 + $0x68] sm:$0xff]  ;;  %v63_v24 = vmax.f32 %v33_v18, 1e-05  ;;  %v37_v25 = vld [vmem:[#allocation2 + $0x70] sm:$0xff]  ;;  %s299_s20 = sshll.u32 %s426_s0, 4  ;;  %s300_s20 = int_to_ptr.vmem [resolvable:$true] %s299_s20 }
  0x1a   :  { %323 = vlog2.f32 %v57_v10  ;;  %v64_v26 = vmax.f32 %v34_v20, 1e-05  ;;  %v38_v27 = vld [vmem:[#allocation2 + $0x78] sm:$0xff]  ;;  %v39_v28 = vld [vmem:[#allocation2 + $0x80] sm:$0xff]  ;;  %v452_v29 = vld [vmem:[#allocation2 + $0x88] sm:$0xff]  ;;  %s397_s21 = scalar_lea.vmem %s300_s20, 3840  ;;  %p402_p9 = scmp.lt.s32.totalorder %s300_s20, %s300_s20 }
  0x1b   :  { %325 = vlog2.f32 %v58_v11  ;;  %v65_v30 = vmax.f32 %v35_v22, 1e-05  ;;  %v66_v31 = vmax.f32 %v36_v23, 1e-05  ;;  %v67_v32 = vmax.f32 %v37_v25, 1e-05  ;;  %p398_p8 = scmp.ne.s32.totalorder %s300_s20, %s397_s21  ;;  %p403_p10 = scmp.lt.s32.totalorder %s397_s21, %s397_s21 }
  0x1c   :  { %327 = vlog2.f32 %v59_v15  ;;  %v454_v33 = vld [vmem:[#allocation2 + $0x90] sm:$0xff]  ;;  %v456_v34 = vld [vmem:[#allocation2 + $0x98] sm:$0xff]  ;;  %v458_v35 = vld [vmem:[#allocation2 + $0xa0] sm:$0xff]  ;;  %v68_v37 = vmax.f32 %v38_v27, 1e-05 }
  0x1d   :  { %329 = vlog2.f32 %v60_v16  ;;  %v69_v38 = vmax.f32 %v39_v28, 1e-05  ;;  %v70_v39 = vmax.f32 %v452_v29, 1e-05  ;;  %v71_v42 = vmax.f32 %v454_v33, 1e-05  ;;  %p404_p11 = por %p403_p10, %p402_p9 }
  0x1e   :  { %331 = vlog2.f32 %v61_v19  ;;  %v462_v43 = vld [vmem:[#allocation2 + $0xa8] sm:$0xff]  ;;  %v464_v44 = vld [vmem:[#allocation2 + $0xb0] sm:$0xff]  ;;  %v72_v47 = vmax.f32 %v456_v34, 1e-05  ;;  %v73_v48 = vmax.f32 %v458_v35, 1e-05 }
  0x1f   :  { %333 = vlog2.f32 %v62_v21  ;;  %v74_v52 = vmax.f32 %v462_v43, 1e-05  ;;  %v75_v56 = vmax.f32 %v464_v44, 1e-05  ;;  %p405_p12 = pnand %p404_p11, %p398_p8 }
  0x20   :  { %v316_v36 = vpop.eup %315  ;;  %335 = vlog2.f32 %v63_v24 }
  0x21   :  { %v318_v40 = vpop.eup %317  ;;  %v84_v41 = vmul.f32 0.6931472, %v316_v36  ;;  %337 = vlog2.f32 %v64_v26 }
  0x22   :  { %v320_v45 = vpop.eup %319  ;;  %v86_v46 = vmul.f32 0.6931472, %v318_v40  ;;  %339 = vlog2.f32 %v65_v30 }
  0x23   :  { %v322_v49 = vpop.eup %321  ;;  %v143_v50 = vmul.f32 0.0868589, %v84_v41  ;;  %v88_v51 = vmul.f32 0.6931472, %v320_v45  ;;  %341 = vlog2.f32 %v66_v31 }
  0x24   :  { %v324_v53 = vpop.eup %323  ;;  %v144_v54 = vmul.f32 0.0868589, %v86_v46  ;;  %v90_v55 = vmul.f32 0.6931472, %v322_v49  ;;  %343 = vlog2.f32 %v67_v32 }
  0x25   :  { %v326_v57 = vpop.eup %325  ;;  %v173_v58 = vadd.f32 1.0, %v143_v50  ;;  %v145_v59 = vmul.f32 0.0868589, %v88_v51  ;;  %v92_v60 = vmul.f32 0.6931472, %v324_v53  ;;  %345 = vlog2.f32 %v68_v37 }
  0x26   :  { %v328_v61 = vpop.eup %327  ;;  %v174_v62 = vadd.f32 1.0, %v144_v54  ;;  %v146_v63 = vmul.f32 0.0868589, %v90_v55  ;;  %v94_v0 = vmul.f32 0.6931472, %v326_v57  ;;  %347 = vlog2.f32 %v69_v38 }
  0x27   :  { %v330_v1 = vpop.eup %329  ;;  %v203_v2 = vmax.f32 %v173_v58, 0.0  ;;  %v175_v3 = vadd.f32 1.0, %v145_v59  ;;  %v147_v4 = vmul.f32 0.0868589, %v92_v60  ;;  %v96_v5 = vmul.f32 0.6931472, %v328_v61 }
  0x28   :  { %v332_v6 = vpop.eup %331  ;;  %v204_v7 = vmax.f32 %v174_v62, 0.0  ;;  %v176_v8 = vadd.f32 1.0, %v146_v63  ;;  %v148_v9 = vmul.f32 0.0868589, %v94_v0  ;;  %v98_v10 = vmul.f32 0.6931472, %v330_v1 }
  0x29   :  { %v334_v11 = vpop.eup %333  ;;  %v233_v12 = vmin.f32 %v203_v2, 1.0  ;;  %v205_v13 = vmax.f32 %v175_v3, 0.0  ;;  %v177_v14 = vadd.f32 1.0, %v147_v4  ;;  %v149_v15 = vmul.f32 0.0868589, %v96_v5 }
  0x2a   :  { %v336_v16 = vpop.eup %335  ;;  %v234_v17 = vmin.f32 %v204_v7, 1.0  ;;  %v206_v18 = vmax.f32 %v176_v8, 0.0  ;;  %v178_v19 = vadd.f32 1.0, %v148_v9  ;;  %v150_v20 = vmul.f32 0.0868589, %v98_v10 }
  0x2b   :  { %v338_v21 = vpop.eup %337  ;;  %263 = vst [vmem:[#allocation5] sm:$0xff] %v233_v12  ;;  %v235_v22 = vmin.f32 %v205_v13, 1.0  ;;  %v207_v23 = vmax.f32 %v177_v14, 0.0  ;;  %v179_v24 = vadd.f32 1.0, %v149_v15  ;;  %v100_v25 = vmul.f32 0.6931472, %v332_v6 }
  0x2c   :  { %v340_v26 = vpop.eup %339  ;;  %264 = vst [vmem:[#allocation5 + $0x8] sm:$0xff] %v234_v17  ;;  %v236_v27 = vmin.f32 %v206_v18, 1.0  ;;  %v208_v28 = vmax.f32 %v178_v19, 0.0  ;;  %v180_v30 = vadd.f32 1.0, %v150_v20  ;;  %v102_v31 = vmul.f32 0.6931472, %v334_v11 }
  0x2d   :  { %v342_v32 = vpop.eup %341  ;;  %266 = vst.msk [vmem:[#allocation5 + $0x10] sm:$0xff] %vm265_vm0, %v235_v22  ;;  %v237_v36 = vmin.f32 %v207_v23, 1.0  ;;  %v209_v37 = vmax.f32 %v179_v24, 0.0  ;;  %v151_v38 = vmul.f32 0.0868589, %v100_v25  ;;  %v46_v19 = vld [vmem:[#allocation2 + $0xb8] sm:$0xff]  ;;  %349 = vlog2.f32 %v70_v39 }
  0x2e   :  { %v104_v40 = vmul.f32 0.6931472, %v336_v16  ;;  %v344_v41 = vpop.eup %343  ;;  %267 = vst [vmem:[#allocation5 + $0x18] sm:$0xff] %v236_v27  ;;  %v238_v45 = vmin.f32 %v208_v28, 1.0  ;;  %v210_v46 = vmax.f32 %v180_v30, 0.0  ;;  %v47_v23 = vld [vmem:[#allocation2 + $0xc0] sm:$0xff]  ;;  %351 = vlog2.f32 %v71_v42 }
  0x2f   :  { %v152_v49 = vmul.f32 0.0868589, %v102_v31  ;;  %v106_v50 = vmul.f32 0.6931472, %v338_v21  ;;  %v346_v51 = vpop.eup %345  ;;  %268 = vst [vmem:[#allocation5 + $0x20] sm:$0xff] %v237_v36  ;;  %v239_v53 = vmin.f32 %v209_v37, 1.0  ;;  %353 = vlog2.f32 %v72_v47 }
  0x30   :  { %v181_v54 = vadd.f32 1.0, %v151_v38  ;;  %v153_v55 = vmul.f32 0.0868589, %v104_v40  ;;  %v108_v57 = vmul.f32 0.6931472, %v340_v26  ;;  %v348_v58 = vpop.eup %347  ;;  %269 = vst.msk [vmem:[#allocation5 + $0x28] sm:$0xff] %vm265_vm0, %v238_v45  ;;  %355 = vlog2.f32 %v73_v48 }
  0x31   :  { %v240_v59 = vmin.f32 %v210_v46, 1.0  ;;  %v182_v60 = vadd.f32 1.0, %v152_v49  ;;  %v154_v61 = vmul.f32 0.0868589, %v106_v50  ;;  %v110_v62 = vmul.f32 0.6931472, %v342_v32 }
  0x32   :  { %270 = vst [vmem:[#allocation5 + $0x30] sm:$0xff] %v239_v53  ;;  %v211_v63 = vmax.f32 %v181_v54, 0.0  ;;  %v183_v0 = vadd.f32 1.0, %v153_v55  ;;  %v155_v1 = vmul.f32 0.0868589, %v108_v57  ;;  %v48_v27 = vld [vmem:[#allocation2 + $0xc8] sm:$0xff]  ;;  %357 = vlog2.f32 %v74_v52 }
  0x33   :  { %v112_v2 = vmul.f32 0.6931472, %v344_v41  ;;  %271 = vst [vmem:[#allocation5 + $0x38] sm:$0xff] %v240_v59  ;;  %v212_v3 = vmax.f32 %v182_v60, 0.0  ;;  %v184_v4 = vadd.f32 1.0, %v154_v61  ;;  %v49_v32 = vld [vmem:[#allocation2 + $0xd0] sm:$0xff]  ;;  %359 = vlog2.f32 %v75_v56 }
  0x34   :  { %v156_v5 = vmul.f32 0.0868589, %v110_v62  ;;  %v114_v6 = vmul.f32 0.6931472, %v346_v51  ;;  %v241_v7 = vmin.f32 %v211_v63, 1.0  ;;  %v213_v8 = vmax.f32 %v183_v0, 0.0 }
  0x35   :  { %v185_v9 = vadd.f32 1.0, %v155_v1  ;;  %v157_v10 = vmul.f32 0.0868589, %v112_v2  ;;  %v242_v11 = vmin.f32 %v212_v3, 1.0  ;;  %v214_v12 = vmax.f32 %v184_v4, 0.0  ;;  %v50_v37 = vld [vmem:[#allocation2 + $0xd8] sm:$0xff] }
  0x36   :  { %v186_v13 = vadd.f32 1.0, %v156_v5  ;;  %v158_v14 = vmul.f32 0.0868589, %v114_v6  ;;  %272 = vst.msk [vmem:[#allocation5 + $0x40] sm:$0xff] %vm265_vm0, %v241_v7  ;;  %v243_v15 = vmin.f32 %v213_v8, 1.0  ;;  %v51_v38 = vld [vmem:[#allocation2 + $0xe0] sm:$0xff] }
  0x37   :  { %v215_v16 = vmax.f32 %v185_v9, 0.0  ;;  %v187_v17 = vadd.f32 1.0, %v157_v10  ;;  %v116_v18 = vmul.f32 0.6931472, %v348_v58  ;;  %273 = vst [vmem:[#allocation5 + $0x48] sm:$0xff] %v242_v11  ;;  %v244_v20 = vmin.f32 %v214_v12, 1.0  ;;  %v350_v43 = vpop.eup %349 }
  0x38   :  { %v216_v21 = vmax.f32 %v186_v13, 0.0  ;;  %v188_v22 = vadd.f32 1.0, %v158_v14  ;;  %274 = vst [vmem:[#allocation5 + $0x50] sm:$0xff] %v243_v15  ;;  %v76_v31 = vmax.f32 %v46_v19, 1e-05  ;;  %v52_v40 = vld [vmem:[#allocation2 + $0xe8] sm:$0xff]  ;;  %v352_v52 = vpop.eup %351 }
  0x39   :  { %v245_v24 = vmin.f32 %v215_v16, 1.0  ;;  %v217_v25 = vmax.f32 %v187_v17, 0.0  ;;  %v159_v26 = vmul.f32 0.0868589, %v116_v18  ;;  %275 = vst.msk [vmem:[#allocation5 + $0x58] sm:$0xff] %vm265_vm0, %v244_v20  ;;  %v354_v49 = vpop.eup %353 }
  0x3a   :  { %v246_v28 = vmin.f32 %v216_v21, 1.0  ;;  %v218_v30 = vmax.f32 %v188_v22, 0.0  ;;  %v77_v36 = vmax.f32 %v47_v23, 1e-05  ;;  %v78_v42 = vmax.f32 %v48_v27, 1e-05  ;;  %v356_v56 = vpop.eup %355 }
  0x3b   :  { %276 = vst [vmem:[#allocation5 + $0x60] sm:$0xff] %v245_v24  ;;  %v247_v29 = vmin.f32 %v217_v25, 1.0  ;;  %v189_v39 = vadd.f32 1.0, %v159_v26  ;;  %v79_v47 = vmax.f32 %v49_v32, 1e-05  ;;  %361 = vlog2.f32 %v76_v31 }
  0x3c   :  { %277 = vst [vmem:[#allocation5 + $0x68] sm:$0xff] %v246_v28  ;;  %v248_v33 = vmin.f32 %v218_v30, 1.0  ;;  %v80_v35 = vmax.f32 %v50_v37, 1e-05  ;;  %363 = vlog2.f32 %v77_v36  ;;  %v81_v41 = vmax.f32 %v51_v38, 1e-05  ;;  %v358_v53 = vpop.eup %357 }
  0x3d   :  { %278 = vst.msk [vmem:[#allocation5 + $0x70] sm:$0xff] %vm265_vm0, %v247_v29  ;;  %v219_v34 = vmax.f32 %v189_v39, 0.0  ;;  %365 = vlog2.f32 %v78_v42  ;;  %v82_v45 = vmax.f32 %v52_v40, 1e-05  ;;  %v118_v46 = vmul.f32 0.6931472, %v350_v43  ;;  %v360_v57 = vpop.eup %359 }
  0x3e   :  { %279 = vst [vmem:[#allocation5 + $0x78] sm:$0xff] %v248_v33  ;;  %367 = vlog2.f32 %v79_v47  ;;  %v120_v44 = vmul.f32 0.6931472, %v352_v52  ;;  %v122_v51 = vmul.f32 0.6931472, %v354_v49 }
  0x3f   :  { %v249_v48 = vmin.f32 %v219_v34, 1.0  ;;  %369 = vlog2.f32 %v80_v35  ;;  %v160_v50 = vmul.f32 0.0868589, %v118_v46  ;;  %v124_v55 = vmul.f32 0.6931472, %v356_v56 }
  0x40   :  { %371 = vlog2.f32 %v81_v41  ;;  %v161_v54 = vmul.f32 0.0868589, %v120_v44  ;;  %v162_v59 = vmul.f32 0.0868589, %v122_v51  ;;  %v126_v60 = vmul.f32 0.6931472, %v358_v53 }
  0x41   :  { %280 = vst [vmem:[#allocation5 + $0x80] sm:$0xff] %v249_v48  ;;  %373 = vlog2.f32 %v82_v45  ;;  %v190_v58 = vadd.f32 1.0, %v160_v50  ;;  %v163_v63 = vmul.f32 0.0868589, %v124_v55  ;;  %v128_v0 = vmul.f32 0.6931472, %v360_v57 }
  0x42   :  { %v191_v62 = vadd.f32 1.0, %v161_v54  ;;  %v192_v3 = vadd.f32 1.0, %v162_v59  ;;  %v164_v4 = vmul.f32 0.0868589, %v126_v60 }
  0x43   :  { %v220_v2 = vmax.f32 %v190_v58, 0.0  ;;  %v193_v8 = vadd.f32 1.0, %v163_v63  ;;  %v165_v9 = vmul.f32 0.0868589, %v128_v0 }
  0x44   :  { %v221_v7 = vmax.f32 %v191_v62, 0.0  ;;  %v222_v13 = vmax.f32 %v192_v3, 0.0  ;;  %v194_v14 = vadd.f32 1.0, %v164_v4 }
  0x45   :  { %v362_v61 = vpop.eup %361  ;;  %v250_v12 = vmin.f32 %v220_v2, 1.0  ;;  %v223_v18 = vmax.f32 %v193_v8, 0.0  ;;  %v195_v19 = vadd.f32 1.0, %v165_v9 }
  0x46   :  { %v364_v1 = vpop.eup %363  ;;  %v130_v5 = vmul.f32 0.6931472, %v362_v61  ;;  %v251_v17 = vmin.f32 %v221_v7, 1.0  ;;  %v252_v22 = vmin.f32 %v222_v13, 1.0  ;;  %v224_v23 = vmax.f32 %v194_v14, 0.0 }
  0x47   :  { %v366_v6 = vpop.eup %365  ;;  %v132_v10 = vmul.f32 0.6931472, %v364_v1  ;;  %281 = vst.msk [vmem:[#allocation5 + $0x88] sm:$0xff] %vm265_vm0, %v250_v12  ;;  %v253_v27 = vmin.f32 %v223_v18, 1.0  ;;  %v225_v28 = vmax.f32 %v195_v19, 0.0 }
  0x48   :  { %v368_v11 = vpop.eup %367  ;;  %v166_v15 = vmul.f32 0.0868589, %v130_v5  ;;  %v134_v25 = vmul.f32 0.6931472, %v366_v6  ;;  %282 = vst [vmem:[#allocation5 + $0x90] sm:$0xff] %v251_v17  ;;  %283 = vst [vmem:[#allocation5 + $0x98] sm:$0xff] %v252_v22 }
  0x49   :  { %v370_v16 = vpop.eup %369  ;;  %v167_v20 = vmul.f32 0.0868589, %v132_v10  ;;  %v136_v31 = vmul.f32 0.6931472, %v368_v11  ;;  %v254_v32 = vmin.f32 %v224_v23, 1.0  ;;  %284 = vst.msk [vmem:[#allocation5 + $0xa0] sm:$0xff] %vm265_vm0, %v253_v27 }
  0x4a   :  { %v372_v21 = vpop.eup %371  ;;  %v196_v24 = vadd.f32 1.0, %v166_v15  ;;  %v168_v39 = vmul.f32 0.0868589, %v134_v25  ;;  %v138_v36 = vmul.f32 0.6931472, %v370_v16  ;;  %v255_v37 = vmin.f32 %v225_v28, 1.0 }
  0x4b   :  { %v374_v26 = vpop.eup %373  ;;  %v197_v30 = vadd.f32 1.0, %v167_v20  ;;  %v169_v42 = vmul.f32 0.0868589, %v136_v31  ;;  %v140_v38 = vmul.f32 0.6931472, %v372_v21  ;;  %285 = vst [vmem:[#allocation5 + $0xa8] sm:$0xff] %v254_v32 }
  0x4c   :  { %v226_v29 = vmax.f32 %v196_v24, 0.0  ;;  %v198_v47 = vadd.f32 1.0, %v168_v39  ;;  %v170_v40 = vmul.f32 0.0868589, %v138_v36  ;;  %v142_v35 = vmul.f32 0.6931472, %v374_v26 }
  0x4d   :  { %v227_v33 = vmax.f32 %v197_v30, 0.0  ;;  %286 = vst [vmem:[#allocation5 + $0xb0] sm:$0xff] %v255_v37  ;;  %v199_v41 = vadd.f32 1.0, %v169_v42  ;;  %v171_v45 = vmul.f32 0.0868589, %v140_v38 }
  0x4e   :  { %v256_v34 = vmin.f32 %v226_v29, 1.0  ;;  %v228_v43 = vmax.f32 %v198_v47, 0.0  ;;  %v200_v52 = vadd.f32 1.0, %v170_v40  ;;  %v172_v46 = vmul.f32 0.0868589, %v142_v35 }
  0x4f   :  { %v257_v48 = vmin.f32 %v227_v33, 1.0  ;;  %v229_v49 = vmax.f32 %v199_v41, 0.0  ;;  %v201_v44 = vadd.f32 1.0, %v171_v45 }
  0x50   :  { %287 = vst.msk [vmem:[#allocation5 + $0xb8] sm:$0xff] %vm265_vm0, %v256_v34  ;;  %v258_v56 = vmin.f32 %v228_v43, 1.0  ;;  %v230_v50 = vmax.f32 %v200_v52, 0.0  ;;  %v202_v51 = vadd.f32 1.0, %v172_v46 }
  0x51   :  { %288 = vst [vmem:[#allocation5 + $0xc0] sm:$0xff] %v257_v48  ;;  %v259_v53 = vmin.f32 %v229_v49, 1.0  ;;  %v231_v54 = vmax.f32 %v201_v44, 0.0 }
  0x52   :  { %289 = vst [vmem:[#allocation5 + $0xc8] sm:$0xff] %v258_v56  ;;  %v260_v55 = vmin.f32 %v230_v50, 1.0  ;;  %v232_v57 = vmax.f32 %v202_v51, 0.0 }
  0x53   :  { %290 = vst.msk [vmem:[#allocation5 + $0xd0] sm:$0xff] %vm265_vm0, %v259_v53  ;;  %v261_v58 = vmin.f32 %v231_v54, 1.0 }
  0x54   :  { %291 = vst [vmem:[#allocation5 + $0xd8] sm:$0xff] %v260_v55  ;;  %v262_v59 = vmin.f32 %v232_v57, 1.0 }
  0x55   :  { %292 = vst [vmem:[#allocation5 + $0xe0] sm:$0xff] %v261_v58 }
  0x56   :  { %293 = vst.msk [vmem:[#allocation5 + $0xe8] sm:$0xff] %vm265_vm0, %v262_v59 }
  0x57   :  { %408 = shalt.err (!%p405_p12)
}
  0x58   :  { %s409_s24 = scalar_lea.hbm %s508_s1, 3840 }
  0x59   :  { %p410_p13 = scmp.ne.s32.totalorder %s508_s1, %s409_s24  ;;  %p413_p0 = scmp.lt.u32.totalorder %s409_s24, %s508_s1 }
  0x5b   :  { %p415_p1 = pnand %p413_p0, %p410_p13 }
  0x5d   :  { %418 = shalt.err (!%p415_p1)
}
  0x5e   :  { %305 = dma.vmem_to_hbm [thread:$0]  %s300_s20, 3840, %s508_s1, [#allocation4], %s424_s16, %s424_s16, %s425_s17  }
  0x5f   :  { %421 = dma.done.wait [#allocation4], 3840  }
  0x60   :  { %422 = vsyncadd [#allocation4], 4294963456 }
  0x61   :  { %309 = vsyncpa [#allocation3], 1 }
  0x62   :  { %310 = vsyncpa [#allocation4], 1 }

</bundles_post_ra>
